<compile_context>
chip_gen: v7x
topology: tpu7x:2x2x1
jax: 0.10.0
libtpu: 0.0.40
codegen_flags: <defaults>
</compile_context>

<pallas_src>
import functools

import jax
import jax.numpy as jnp
from jax.experimental import pallas as pl
from jax.experimental.pallas import tpu as pltpu

STDV = 0.01
LANE = 128          # TPU lane width (last dim)
SUBLANE = 8         # f32 sublane count (second-to-last dim)
NEG_BIAS = -1e30    # bias for padded output lanes -> exp() underflows to 0
VMEM_BUDGET = 48 * 1024 * 1024   # headroom under v7x's 64 MiB physical VMEM


def _round_up(n, m):
    return ((n + m - 1) // m) * m


def mlp_softmax_kernel(x_ref, w1_ref, b1_ref, w2_ref, b2_ref, out_ref):
    # Hidden layer: linear (MXU, f32 accumulate) + bias + tanh, all math in f32.
    # Padded input/hidden columns have zero weights and zero bias -> tanh(0)=0,
    # so they contribute nothing downstream.
    h = jnp.dot(x_ref[...], w1_ref[...], preferred_element_type=jnp.float32)
    h = jnp.tanh(h + b1_ref[...])

    # Output layer: cast h to the weight dtype (bf16 on the batched path, no-op
    # on the f32 tiny path) so the MXU sees matching inputs; accumulate in f32.
    logits = jnp.dot(h.astype(w2_ref.dtype), w2_ref[...],
                     preferred_element_type=jnp.float32)
    logits = logits + b2_ref[...]   # padded output lanes get bias = NEG_BIAS

    # Softmax over the last axis (PyTorch nn.Softmax() on 2-D input -> dim=1).
    # Padded lanes: exp(NEG_BIAS - m) == 0, so they don't perturb the sum.
    m = jnp.max(logits, axis=-1, keepdims=True)
    e = jnp.exp(logits - m)
    denom = jnp.sum(e, axis=-1, keepdims=True)
    # Exact divide (not approx reciprocal): rows must sum to 1 to f32 precision.
    out_ref[...] = (e / denom).astype(out_ref.dtype)


def prepare_params(w1, b1, w2, b2):
    """Pad parameters to lane/sublane-friendly shapes ONCE, at init time.

    w1: (D, H), b1: (H,), w2: (H, O), b2: (O,).  Returns a dict of arrays with
    features padded to multiples of 128 lanes; bf16 copies of the weight
    matrices are cached for the memory-bound batched path.
    """
    D, H = w1.shape
    O = w2.shape[1]
    Dp = _round_up(max(D, LANE), LANE)
    Hp = _round_up(max(H, LANE), LANE)
    Op = _round_up(max(O, LANE), LANE)

    f32 = jnp.float32
    w1p = jnp.zeros((Dp, Hp), f32).at[:D, :H].set(w1.astype(f32))
    b1p = jnp.zeros((1, Hp), f32).at[:, :H].set(b1.reshape(1, -1).astype(f32))
    w2p = jnp.zeros((Hp, Op), f32).at[:H, :O].set(w2.astype(f32))
    b2p = jnp.full((1, Op), NEG_BIAS, f32).at[:, :O].set(b2.reshape(1, -1).astype(f32))

    return {
        "w1": w1p, "b1": b1p, "w2": w2p, "b2": b2p,        # f32 (tiny path)
        "w1_bf16": w1p.astype(jnp.bfloat16),               # bf16 (batched path)
        "w2_bf16": w2p.astype(jnp.bfloat16),
    }


def my_model_forward(x, params, *, out_dim, block_b=2048,
                     bf16_batched=True, out_dtype=jnp.float32):
    """softmax(tanh(x @ w1 + b1) @ w2 + b2) with pre-padded params."""
    B, D = x.shape
    Dp, Hp = params["w1"].shape
    Op = params["w2"].shape[1]

    use_grid = B > block_b
    Bp = _round_up(max(B, SUBLANE), SUBLANE)   # batch -> multiple of 8 only

    if use_grid and bf16_batched:
        # Memory-bound batched path: bf16 matmul operands, f32 accumulation.
        x_dtype = jnp.bfloat16
        w1, w2 = params["w1_bf16"], params["w2_bf16"]
    else:
        # Tiny latency-bound path: keep everything f32 (also safest on v5e).
        x_dtype = jnp.float32
        w1, w2 = params["w1"], params["w2"]
    b1, b2 = params["b1"], params["b2"]

    # Only materialize a padded copy of x when shapes actually require it.
    xp = x.astype(x_dtype)
    if D != Dp or B != Bp:
        xp = jnp.zeros((Bp, Dp), x_dtype).at[:B, :D].set(xp)

    in_itemsize = jnp.dtype(x_dtype).itemsize
    out_itemsize = jnp.dtype(out_dtype).itemsize
    cost = pl.CostEstimate(
        flops=2 * Bp * (Dp * Hp + Hp * Op),
        transcendentals=Bp * (Hp + Op),
        bytes_accessed=(Bp * Dp + Dp * Hp + Hp * Op) * in_itemsize
                       + (Hp + Op) * 4
                       + Bp * Op * out_itemsize,
    )
    out_shape = jax.ShapeDtypeStruct((Bp, Op), out_dtype)

    if not use_grid:
        # Whole working set lives in VMEM; no grid/pipeline machinery at all.
        vmem = pltpu.MemorySpace.VMEM
        out_p = pl.pallas_call(
            mlp_softmax_kernel,
            out_shape=out_shape,
            in_specs=[pl.BlockSpec(memory_space=vmem)] * 5,
            out_specs=pl.BlockSpec(memory_space=vmem),
            cost_estimate=cost,
        )(xp, w1, b1, w2, b2)
    else:
        # Batched path: tile only the batch axis; weights/biases stay resident
        # in VMEM (constant index_maps, single-buffered).
        tb = _round_up(min(block_b, Bp), SUBLANE)

        # VMEM budget (v7x has 64 MiB; leave headroom).
        w_bytes = (w1.size * w1.dtype.itemsize + w2.size * w2.dtype.itemsize
                   + b1.size * 4 + b2.size * 4)

        def act_bytes(t):  # double-buffered x tile + out tile
            return 2 * t * Dp * in_itemsize + 2 * t * Op * out_itemsize

        while tb > 256 and w_bytes + act_bytes(tb) > VMEM_BUDGET:
            tb = _round_up(tb // 2, SUBLANE)
        # TODO(synk): if the two weight matrices alone blow the VMEM budget
        # (H, O >~ 2048), add a K-reduction grid axis over Hp with an f32 VMEM
        # accumulator instead of keeping both weights resident.

        # Balance the tiles over the grid (guarantees >= 2 steps here, so the
        # "parallel" batch axis actually feeds both v7x TensorCores).
        num_tiles = pl.cdiv(Bp, tb)
        tb = _round_up(pl.cdiv(Bp, num_tiles), SUBLANE)
        num_tiles = pl.cdiv(Bp, tb)

        vmem_limit = int(min(max(32 * 1024 * 1024,
                                 1.5 * (w_bytes + act_bytes(tb)) + (2 << 20)),
                             64 * 1024 * 1024))

        resident = dict(pipeline_mode=pl.Buffered(1))  # block index never changes
        out_p = pl.pallas_call(
            mlp_softmax_kernel,
            out_shape=out_shape,
            grid_spec=pl.GridSpec(
                grid=(num_tiles,),
                in_specs=[
                    pl.BlockSpec((tb, Dp), lambda i: (i, 0)),
                    pl.BlockSpec((Dp, Hp), lambda i: (0, 0), **resident),
                    pl.BlockSpec((1, Hp), lambda i: (0, 0), **resident),
                    pl.BlockSpec((Hp, Op), lambda i: (0, 0), **resident),
                    pl.BlockSpec((1, Op), lambda i: (0, 0), **resident),
                ],
                out_specs=pl.BlockSpec((tb, Op), lambda i: (i, 0)),
            ),
            compiler_params=pltpu.CompilerParams(
                dimension_semantics=("parallel",),
                vmem_limit_bytes=vmem_limit,
            ),
            cost_estimate=cost,
        )(xp, w1, b1, w2, b2)

    # Padded batch rows / output lanes are sliced away here (fused under jit).
    return out_p[:B, :out_dim]


if __name__ == "__main__":
    # Sizes implied by the module: data_size -> hidden_size -> output_size
    batch, data_size, hidden_size, output_size = 8, 32, 32, 16

    key = jax.random.PRNGKey(0)
    k_x, k_w1, k_b1, k_w2, k_b2 = jax.random.split(key, 5)

    x = jax.random.normal(k_x, (batch, data_size), dtype=jnp.float32)

    # Deterministic init matching .normal_(0, STDV); stored as (in, out) so the
    # kernel computes x @ W + b (== PyTorch's x @ weight.T + bias).
    w1 = STDV * jax.random.normal(k_w1, (data_size, hidden_size), dtype=jnp.float32)
    b1 = STDV * jax.random.normal(k_b1, (hidden_size,), dtype=jnp.float32)
    w2 = STDV * jax.random.normal(k_w2, (hidden_size, output_size), dtype=jnp.float32)
    b2 = STDV * jax.random.normal(k_b2, (output_size,), dtype=jnp.float32)

    # Pad/cast parameters once at init; jit the forward so the remaining
    # per-call pad + slice fuse with the kernel.
    params = prepare_params(w1, b1, w2, b2)
    fwd = jax.jit(functools.partial(my_model_forward, out_dim=output_size))

    out = jax.block_until_ready(fwd(x, params))

    # Reference check in plain JAX
    ref_h = jnp.tanh(x @ w1 + b1)
    ref = jax.nn.softmax(ref_h @ w2 + b2, axis=-1)

    assert out.shape == (batch, output_size)
    assert jnp.allclose(out, ref, atol=1e-4, rtol=1e-4), "mismatch vs reference"
    assert jnp.allclose(jnp.sum(out, axis=-1), 1.0, atol=1e-4), "rows not normalized"

    print("KERNEL_OK")
</pallas_src>

<mosaic_0001>
module attributes {stable_mosaic.version = 11 : i64} {
  func.func @mlp_softmax_kernel(%arg0: memref<8x128xf32, #tpu.memory_space<vmem>>, %arg1: memref<128x128xf32, #tpu.memory_space<vmem>>, %arg2: memref<1x128xf32, #tpu.memory_space<vmem>>, %arg3: memref<128x128xf32, #tpu.memory_space<vmem>>, %arg4: memref<1x128xf32, #tpu.memory_space<vmem>>, %arg5: memref<8x128xf32, #tpu.memory_space<vmem>>) attributes {dimension_semantics = [], scalar_prefetch = 0 : i64, scratch_operands = 0 : i64, tpu.core_type = #tpu.core_type<tc>} {
    %c0 = arith.constant 0 : index
    %c0_0 = arith.constant 0 : index
    %0 = vector.load %arg0[%c0, %c0_0] : memref<8x128xf32, #tpu.memory_space<vmem>>, vector<8x128xf32>
    %c0_1 = arith.constant 0 : index
    %c0_2 = arith.constant 0 : index
    %1 = vector.load %arg1[%c0_1, %c0_2] : memref<128x128xf32, #tpu.memory_space<vmem>>, vector<128x128xf32>
    %cst = arith.constant dense<0.000000e+00> : vector<8x128xf32>
    %2 = tpu.matmul %0, %1, %cst {dimension_numbers = #tpu.dot_dimension_numbers<[1], [0], [0], [1], [0, 0, 1, 1], [], []>} : vector<8x128xf32>, vector<128x128xf32>, vector<8x128xf32> -> vector<8x128xf32>
    %c0_3 = arith.constant 0 : index
    %c0_4 = arith.constant 0 : index
    %3 = vector.load %arg2[%c0_3, %c0_4] : memref<1x128xf32, #tpu.memory_space<vmem>>, vector<1x128xf32>
    %4 = vector.broadcast %3 : vector<1x128xf32> to vector<8x128xf32>
    %5 = arith.addf %2, %4 : vector<8x128xf32>
    %6 = math.tanh %5 : vector<8x128xf32>
    %c0_5 = arith.constant 0 : index
    %c0_6 = arith.constant 0 : index
    %7 = vector.load %arg3[%c0_5, %c0_6] : memref<128x128xf32, #tpu.memory_space<vmem>>, vector<128x128xf32>
    %cst_7 = arith.constant dense<0.000000e+00> : vector<8x128xf32>
    %8 = tpu.matmul %6, %7, %cst_7 {dimension_numbers = #tpu.dot_dimension_numbers<[1], [0], [0], [1], [0, 0, 1, 1], [], []>} : vector<8x128xf32>, vector<128x128xf32>, vector<8x128xf32> -> vector<8x128xf32>
    %c0_8 = arith.constant 0 : index
    %c0_9 = arith.constant 0 : index
    %9 = vector.load %arg4[%c0_8, %c0_9] : memref<1x128xf32, #tpu.memory_space<vmem>>, vector<1x128xf32>
    %10 = vector.broadcast %9 : vector<1x128xf32> to vector<8x128xf32>
    %11 = arith.addf %8, %10 : vector<8x128xf32>
    %cst_10 = arith.constant dense<0xFF800000> : vector<8xf32>
    %12 = vector.multi_reduction <maximumf>, %11, %cst_10 [1] : vector<8x128xf32> to vector<8xf32>
    %13 = vector.shape_cast %12 : vector<8xf32> to vector<8x1xf32>
    %14 = vector.broadcast %13 : vector<8x1xf32> to vector<8x128xf32>
    %15 = arith.subf %11, %14 : vector<8x128xf32>
    %16 = math.exp %15 : vector<8x128xf32>
    %cst_11 = arith.constant dense<0.000000e+00> : vector<8xf32>
    %17 = vector.multi_reduction <add>, %16, %cst_11 [1] : vector<8x128xf32> to vector<8xf32>
    %18 = vector.shape_cast %17 : vector<8xf32> to vector<8x1xf32>
    %19 = vector.broadcast %18 : vector<8x1xf32> to vector<8x128xf32>
    %20 = arith.divf %16, %19 : vector<8x128xf32>
    %c0_12 = arith.constant 0 : index
    %c0_13 = arith.constant 0 : index
    %21 = vector.load %arg5[%c0_12, %c0_13] : memref<8x128xf32, #tpu.memory_space<vmem>>, vector<8x128xf32>
    tpu.vector_store %arg5[%c0_12, %c0_13], %20 {strides = array<i32>} : memref<8x128xf32, #tpu.memory_space<vmem>>, vector<8x128xf32>,
    return
  }
}

</mosaic_0001>

<bundles_post_ra>
// kernel: my_model_forward.1
= control target key start
LH: loop header
LB: loop body
LE: loop exit
PB: predicated region body
PF: predicated region fallthrough
CT: control target
= control target key end

     0   :  { %10 = vsyncpa [#allocation3], 0  ;;  %s602_s0 = inlined_call_operand.vmem [shape: f32[8,128], index: 0, kind: input, shape index: {}]   ;;  %s603_s1 = inlined_call_operand.hbm [shape: f32[128,128], index: 1, kind: input, shape index: {}]   ;;  %s604_s2 = inlined_call_operand.vmem [shape: f32[1,128], index: 2, kind: input, shape index: {}]   ;;  %s605_s3 = inlined_call_operand.hbm [shape: f32[128,128], index: 3, kind: input, shape index: {}]   ;;  %s606_s4 = inlined_call_operand.vmem [shape: f32[1,128], index: 4, kind: input, shape index: {}]   ;;  %s607_s5 = inlined_call_operand.hbm [shape: f32[8,128], index: 5, kind: output, shape index: {}]  }
   0x1   :  { %11 = vsyncpa [#allocation6], 0 }
   0x2   :  { %12 = vsyncpa [#allocation4], 0  ;;  %s503_s18 = smov [#allocation2]   ;;  %s431_s22 = scalar_lea.hbm %s603_s1, 2048 }
   0x3   :  { %s20_s19 = sshll.u32 %s503_s18, 4  ;;  %p432_p0 = scmp.ne.s32.totalorder %s603_s1, %s431_s22  ;;  %s21_s19 = int_to_ptr.vmem [resolvable:$true] %s20_s19 }
   0x4   :  { %p435_p1 = scmp.lt.u32.totalorder %s431_s22, %s603_s1 }
   0x6   :  { %p437_p2 = pnand %p435_p1, %p432_p0 }
   0x8   :  { %440 = shalt.err (!%p437_p2)
}
   0x9   :  { %s441_s27 = scalar_lea.vmem %s21_s19, 2048  ;;  %p446_p4 = scmp.lt.s32.totalorder %s21_s19, %s21_s19 }
   0xa   :  { %p442_p3 = scmp.ne.s32.totalorder %s21_s19, %s441_s27  ;;  %p447_p5 = scmp.lt.s32.totalorder %s441_s27, %s441_s27 }
   0xc   :  { %p448_p6 = por %p447_p5, %p446_p4 }
   0xe   :  { %p449_p7 = pnand %p448_p6, %p442_p3 }
  0x10   :  { %452 = shalt.err (!%p449_p7)
}
  0x11   :  { %s504_s28 = smov 128   ;;  %s505_s29 = smov 8  }
  0x12   :  { %26 = dma.hbm_to_vmem [thread:$0]  %s603_s1, 2048, %s21_s19, [#allocation3], %s504_s28, %s504_s28, %s505_s29  }
  0x13   :  { %s506_s7 = smov [#allocation5]   ;;  %s453_s11 = scalar_lea.hbm %s605_s3, 2048 }
  0x14   :  { %s34_s8 = sshll.u32 %s506_s7, 4  ;;  %p454_p8 = scmp.ne.s32.totalorder %s605_s3, %s453_s11  ;;  %s35_s8 = int_to_ptr.vmem [resolvable:$true] %s34_s8 }
  0x15   :  { %p457_p9 = scmp.lt.u32.totalorder %s453_s11, %s605_s3 }
  0x17   :  { %p459_p10 = pnand %p457_p9, %p454_p8 }
  0x19   :  { %462 = shalt.err (!%p459_p10)
}
  0x1a   :  { %s463_s16 = scalar_lea.vmem %s35_s8, 2048  ;;  %p468_p12 = scmp.lt.s32.totalorder %s35_s8, %s35_s8 }
  0x1b   :  { %p464_p11 = scmp.ne.s32.totalorder %s35_s8, %s463_s16  ;;  %p469_p13 = scmp.lt.s32.totalorder %s463_s16, %s463_s16 }
  0x1d   :  { %p470_p0 = por %p469_p13, %p468_p12 }
  0x1f   :  { %p471_p1 = pnand %p470_p0, %p464_p11 }
  0x21   :  { %474 = shalt.err (!%p471_p1)
}
  0x22   :  { %40 = dma.hbm_to_vmem [thread:$0]  %s605_s3, 2048, %s35_s8, [#allocation6], %s504_s28, %s504_s28, %s505_s29  }
  0x23   :  { %497 = dma.done.wait [#allocation3], 2048  }
  0x24   :  { %498 = vsyncadd [#allocation3], 4294965248 }
  0x25   :  { %499 = dma.done.wait [#allocation6], 2048  }
  0x26   :  { %500 = vsyncadd [#allocation6], 4294965248  ;;  %v507_v0 = vmov 0.0|0.0   ;;  %vm508_vm0 = vmmov 0   ;;  %v509_v1 = vmov 0.0   ;;  %v50_v2 = vld [vmem:[#allocation2] sm:$0xff] }
  0x27   :  { %369 = vmatprep.subr.bf16.mxu0 %v507_v0  ;;  %331 = vmatprep.mubr.msk.f32.mxu0 %vm508_vm0, %v509_v1  ;;  %v51_v3 = vld [vmem:[#allocation2 + $0x8] sm:$0xff]  ;;  %v52_v4 = vld [vmem:[#allocation2 + $0x10] sm:$0xff]  ;;  %v53_v6 = vld [vmem:[#allocation2 + $0x18] sm:$0xff] }
  0x28   :  { %393 = vmatprep.subr.bf16.mxu1 %v507_v0  ;;  %366 = vmatprep.mubr.msk.f32.mxu1 %vm508_vm0, %v509_v1  ;;  %v370_v5 = vpack.c.bf16 %v51_v3, %v50_v2  ;;  %v373_v7 = vpack.c.bf16 %v53_v6, %v52_v4  ;;  %v54_v8 = vld [vmem:[#allocation2 + $0x20] sm:$0xff]  ;;  %v55_v9 = vld [vmem:[#allocation2 + $0x28] sm:$0xff]  ;;  %v146_v12 = vld [vmem:[#allocation5 + $0x10] sm:$0xff] }
  0x29   :  { %v144_v10 = vld [vmem:[#allocation5] sm:$0xff]  ;;  %v145_v11 = vld [vmem:[#allocation5 + $0x8] sm:$0xff]  ;;  %v147_v13 = vld [vmem:[#allocation5 + $0x18] sm:$0xff]  ;;  %v376_v14 = vpack.c.bf16 %v55_v9, %v54_v8 }
  0x2a   :  { %371 = vmatpush3.bf16.msra.mxu0 %v370_v5  ;;  %v394_v15 = vpack.c.bf16 %v145_v11, %v144_v10  ;;  %v56_v16 = vld [vmem:[#allocation2 + $0x30] sm:$0xff]  ;;  %v57_v17 = vld [vmem:[#allocation2 + $0x38] sm:$0xff]  ;;  %v397_v18 = vpack.c.bf16 %v147_v13, %v146_v12  ;;  %v148_v19 = vld [vmem:[#allocation5 + $0x20] sm:$0xff] }
  0x2b   :  { %372 = vmatprep.subr.bf16.mxu0 %v507_v0  ;;  %v149_v20 = vld [vmem:[#allocation5 + $0x28] sm:$0xff]  ;;  %v379_v21 = vpack.c.bf16 %v57_v17, %v56_v16  ;;  %v58_v22 = vld [vmem:[#allocation2 + $0x40] sm:$0xff]  ;;  %v150_v25 = vld [vmem:[#allocation5 + $0x30] sm:$0xff] }
  0x2c   :  { %395 = vmatpush3.bf16.msra.mxu1 %v394_v15  ;;  %v59_v23 = vld [vmem:[#allocation2 + $0x48] sm:$0xff]  ;;  %v400_v24 = vpack.c.bf16 %v149_v20, %v148_v19  ;;  %v151_v26 = vld [vmem:[#allocation5 + $0x38] sm:$0xff]  ;;  %v60_v28 = vld [vmem:[#allocation2 + $0x50] sm:$0xff] }
  0x2d   :  { %396 = vmatprep.subr.bf16.mxu1 %v507_v0  ;;  %v382_v27 = vpack.c.bf16 %v59_v23, %v58_v22  ;;  %v61_v29 = vld [vmem:[#allocation2 + $0x58] sm:$0xff]  ;;  %v403_v30 = vpack.c.bf16 %v151_v26, %v150_v25  ;;  %v152_v31 = vld [vmem:[#allocation5 + $0x40] sm:$0xff]  ;;  %v153_v32 = vld [vmem:[#allocation5 + $0x48] sm:$0xff] }
  0x2e   :  { %374 = vmatpush3.bf16.msra.mxu0 %v373_v7  ;;  %v385_v33 = vpack.c.bf16 %v61_v29, %v60_v28  ;;  %v62_v34 = vld [vmem:[#allocation2 + $0x60] sm:$0xff]  ;;  %v63_v35 = vld [vmem:[#allocation2 + $0x68] sm:$0xff]  ;;  %v406_v36 = vpack.c.bf16 %v153_v32, %v152_v31  ;;  %v64_v38 = vld [vmem:[#allocation2 + $0x70] sm:$0xff] }
  0x2f   :  { %375 = vmatprep.subr.bf16.mxu0 %v507_v0  ;;  %v388_v37 = vpack.c.bf16 %v63_v35, %v62_v34  ;;  %v65_v39 = vld [vmem:[#allocation2 + $0x78] sm:$0xff]  ;;  %v49_v41 = vld [vmem:[%s602_s0] sm:$0xff]  ;;  %v154_v42 = vld [vmem:[#allocation5 + $0x50] sm:$0xff] }
  0x30   :  { %398 = vmatpush3.bf16.msra.mxu1 %v397_v18  ;;  %v391_v40 = vpack.c.bf16 %v65_v39, %v64_v38  ;;  %v155_v43 = vld [vmem:[#allocation5 + $0x58] sm:$0xff]  ;;  %v156_v45 = vld [vmem:[#allocation5 + $0x60] sm:$0xff]  ;;  %v157_v46 = vld [vmem:[#allocation5 + $0x68] sm:$0xff] }
  0x31   :  { %399 = vmatprep.subr.bf16.mxu1 %v507_v0  ;;  %v409_v44 = vpack.c.bf16 %v155_v43, %v154_v42  ;;  %v412_v47 = vpack.c.bf16 %v157_v46, %v156_v45  ;;  %v158_v48 = vld [vmem:[#allocation5 + $0x70] sm:$0xff]  ;;  %v159_v49 = vld [vmem:[#allocation5 + $0x78] sm:$0xff]  ;;  %v263_v51 = vld [vmem:[%s604_s2] ss:$0 sm:$0xff]  ;;  %s510_s2 = smov [#allocation7]  }
  0x32   :  { %377 = vmatpush3.bf16.msra.mxu0 %v376_v14  ;;  %v415_v50 = vpack.c.bf16 %v159_v49, %v158_v48  ;;  %v264_v56 = vld [vmem:[%s606_s4] ss:$0 sm:$0xff]  ;;  %s253_s22 = sshll.u32 %s510_s2, 4  ;;  %s254_s22 = int_to_ptr.vmem [resolvable:$true] %s253_s22 }
  0x33   :  { %378 = vmatprep.subr.bf16.mxu0 %v507_v0  ;;  %s475_s23 = scalar_lea.vmem %s254_s22, 128  ;;  %p480_p3 = scmp.lt.s32.totalorder %s254_s22, %s254_s22 }
  0x34   :  { %401 = vmatpush3.bf16.msra.mxu1 %v400_v24  ;;  %p476_p2 = scmp.ne.s32.totalorder %s254_s22, %s475_s23  ;;  %p481_p4 = scmp.lt.s32.totalorder %s475_s23, %s475_s23 }
  0x35   :  { %402 = vmatprep.subr.bf16.mxu1 %v507_v0 }
  0x36   :  { %380 = vmatpush3.bf16.msra.mxu0 %v379_v21  ;;  %p482_p5 = por %p481_p4, %p480_p3 }
  0x37   :  { %381 = vmatprep.subr.bf16.mxu0 %v507_v0 }
  0x38   :  { %404 = vmatpush3.bf16.msra.mxu1 %v403_v30  ;;  %p483_p6 = pnand %p482_p5, %p476_p2 }
  0x39   :  { %405 = vmatprep.subr.bf16.mxu1 %v507_v0 }
  0x3a   :  { %383 = vmatpush3.bf16.msra.mxu0 %v382_v27 }
  0x3b   :  { %384 = vmatprep.subr.bf16.mxu0 %v507_v0 }
  0x3c   :  { %407 = vmatpush3.bf16.msra.mxu1 %v406_v36 }
  0x3d   :  { %408 = vmatprep.subr.bf16.mxu1 %v507_v0 }
  0x3e   :  { %386 = vmatpush3.bf16.msra.mxu0 %v385_v33 }
  0x3f   :  { %387 = vmatprep.subr.bf16.mxu0 %v507_v0 }
  0x40   :  { %410 = vmatpush3.bf16.msra.mxu1 %v409_v44 }
  0x41   :  { %411 = vmatprep.subr.bf16.mxu1 %v507_v0 }
  0x42   :  { %389 = vmatpush3.bf16.msra.mxu0 %v388_v37 }
  0x43   :  { %390 = vmatprep.subr.bf16.mxu0 %v507_v0 }
  0x44   :  { %413 = vmatpush3.bf16.msra.mxu1 %v412_v47 }
  0x45   :  { %414 = vmatprep.subr.bf16.mxu1 %v507_v0 }
  0x46   :  { %392 = vmatpush3.bf16.msra.mxu0 %v391_v40 }
  0x48   :  { %416 = vmatpush3.bf16.msra.mxu1 %v415_v50 }
  0x49   :  { %332 = vmatmul.mubr.f32.vlgmr.msra.gmra.mrb[0].mxu0 %v49_v41 }
 0x11c   :  { %v139_v52 = vpop.f32.mrb[0].mxu0 }
 0x11d   :  { %v140_v53 = vadd.f32 %v263_v51, %v139_v52  ;;  %v333_v54 = vpop.f32.mrb[1].mxu0 }
 0x11f   :  { %425 = vtanh.f32 %v140_v53 }
 0x129   :  { %v426_v55 = vpop.eup %425 }
 0x12a   :  { %367 = vmatmul.mubr.f32.vlgmr.msra.gmra.mrb[0].mxu1 %v426_v55 }
 0x1fd   :  { %v233_v57 = vpop.f32.mrb[0].mxu1 }
 0x1fe   :  { %v234_v58 = vadd.f32 %v264_v56, %v233_v57  ;;  %v368_v59 = vpop.f32.mrb[1].mxu1 }
 0x200   :  { %237 = vmax.xlane.f32.xlu0 %v234_v58 }
 0x28d   :  { %v238_v60 = vpop.xlane.xlu0 %237 }
 0x28e   :  { %v239_v61 = vsub.f32 %v234_v58, %v238_v60 }
 0x290   :  { %v240_v62 = vmul.f32 1.442695, %v239_v61 }
 0x292   :  { %427 = vpow2.f32 %v240_v62 }
 0x29c   :  { %v428_v63 = vpop.eup %427 }
 0x29d   :  { %242 = vadd.xlane.f32.xlu0 %v428_v63 }
 0x32a   :  { %v243_v0 = vpop.xlane.xlu0 %242 }
 0x32b   :  { %429 = vrcp.f32 %v243_v0 }
 0x335   :  { %v430_v1 = vpop.eup %429 }
 0x336   :  { %v245_v2 = vmul.f32 %v430_v1, %v428_v63 }
 0x338   :  { %246 = vst [vmem:[#allocation7] sm:$0xff] %v245_v2 }
 0x339   :  { %486 = shalt.err (!%p483_p6)
}
 0x33a   :  { %s487_s25 = scalar_lea.hbm %s607_s5, 128 }
 0x33b   :  { %p488_p7 = scmp.ne.s32.totalorder %s607_s5, %s487_s25  ;;  %p491_p8 = scmp.lt.u32.totalorder %s487_s25, %s607_s5 }
 0x33d   :  { %p493_p9 = pnand %p491_p8, %p488_p7 }
 0x33f   :  { %496 = shalt.err (!%p493_p9)
}
 0x340   :  { %256 = dma.vmem_to_hbm [thread:$0]  %s254_s22, 128, %s607_s5, [#allocation4]  }
 0x341   :  { %501 = dma.done.wait [#allocation4], 128  }
 0x342   :  { %502 = vsyncadd [#allocation4], 4294967168 }
 0x343   :  { %260 = vsyncpa [#allocation3], 1 }
 0x344   :  { %261 = vsyncpa [#allocation6], 1 }
 0x345   :  { %262 = vsyncpa [#allocation4], 1 }

</bundles_post_ra>
